<compile_context>
chip_gen: v7x
topology: tpu7x:2x2x1
jax: 0.10.0
libtpu: 0.0.40
codegen_flags: <defaults>
</compile_context>

<pallas_src>
import functools

import jax
import jax.numpy as jnp
from jax.experimental import pallas as pl
from jax.experimental.pallas import tpu as pltpu


def _label_smoothing_kernel(pred_ref, tgt_ref, out_ref, *, c_uniform, c_target,
                            tile_batch, total_n):
    i = pl.program_id(0)

    logits = pred_ref[...].astype(jnp.float32)                    # (TB, C)
    tb, c = logits.shape

    # --- log-softmax pieces (lane-axis reductions only) -----------------
    m = jnp.max(logits, axis=-1, keepdims=True)                   # (TB, 1)
    z = logits - m                                                 # (TB, C)
    lse = jnp.log(jnp.sum(jnp.exp(z), axis=-1, keepdims=True))    # (TB, 1)

    # sum_j logp[j] = sum_j z[j] - C * lse
    sum_logp = jnp.sum(z, axis=-1, keepdims=True) - jnp.float32(c) * lse

    # logp[target] = z[target] - lse   (cmp + select + lane-sum extract)
    cls_ids = jax.lax.broadcasted_iota(jnp.int32, (tb, c), 1)
    tgt = tgt_ref[...]                                             # (TB, 1) i32
    z_tgt = jnp.sum(jnp.where(cls_ids == tgt, z, 0.0), axis=-1, keepdims=True)
    logp_tgt = z_tgt - lse

    # loss_row = -c_uniform * sum_j logp[j] - c_target * logp[target]
    per_row = (-jnp.float32(c_uniform) * sum_logp
               - jnp.float32(c_target) * logp_tgt)                 # (TB, 1)

    # Mask rows beyond the true batch (last tile may overhang the array).
    row_ids = jax.lax.broadcasted_iota(jnp.int32, (tb, 1), 0) + i * tile_batch
    per_row = jnp.where(row_ids < total_n, per_row, 0.0)

    # One partial per tile, broadcast into a lane-dense (8, 128) block.
    tile_sum = jnp.sum(per_row)
    out_ref[...] = jnp.full((8, 128), tile_sum, dtype=jnp.float32)


def _choose_tile_batch(n, c, itemsize, *, budget_bytes=4 * 1024 * 1024,
                       max_tile=1024):
    """Biggest row tile whose double-buffered pred footprint fits the budget."""
    rows = max(8, budget_bytes // (2 * max(c, 1) * itemsize))
    rows = min(rows, max_tile)
    rows = (rows // 8) * 8
    n_padded = ((n + 7) // 8) * 8
    return max(8, min(rows, n_padded))


def label_smoothing_loss(pred, target, *, classes, smoothing=0.1,
                         tile_batch=None):
    """pred: (N, C) float32/bfloat16, target: (N,) int. Returns scalar f32."""
    n, c = pred.shape
    confidence = 1.0 - smoothing
    base = smoothing / (classes - 1)
    # NOTE: smoothing/classes is intentionally added to the target entry too,
    # matching the PyTorch module (true_dist += self.smoothing / self.cls).
    c_uniform = base + smoothing / classes       # weight on every logp[j]
    c_target = confidence - base                 # extra weight on logp[target]

    if tile_batch is None:
        tile_batch = _choose_tile_batch(n, c, jnp.dtype(pred.dtype).itemsize)
    num_tiles = (n + tile_batch - 1) // tile_batch

    tgt2d = target.astype(jnp.int32).reshape(n, 1)

    kernel = functools.partial(
        _label_smoothing_kernel,
        c_uniform=c_uniform,
        c_target=c_target,
        tile_batch=tile_batch,
        total_n=n,
    )

    partials = pl.pallas_call(
        kernel,
        out_shape=jax.ShapeDtypeStruct((num_tiles * 8, 128), jnp.float32),
        grid_spec=pltpu.PrefetchScalarGridSpec(
            num_scalar_prefetch=0,
            grid=(num_tiles,),
            in_specs=[
                pl.BlockSpec((tile_batch, c), lambda i: (i, 0)),
                pl.BlockSpec((tile_batch, 1), lambda i: (i, 0)),
            ],
            out_specs=pl.BlockSpec((8, 128), lambda i: (i, 0)),
        ),
        compiler_params=pltpu.CompilerParams(
            dimension_semantics=("parallel",),
            vmem_limit_bytes=32 * 1024 * 1024,
        ),
    )(pred, tgt2d)

    # One scalar per tile lives at [tile*8, 0]; mean over the true batch size.
    per_tile = partials.reshape(num_tiles, 8, 128)[:, 0, 0]
    return jnp.sum(per_tile) / jnp.float32(n)


def _reference(pred, target, classes, smoothing=0.1):
    confidence = 1.0 - smoothing
    logp = jax.nn.log_softmax(pred.astype(jnp.float32), axis=-1)
    n, c = pred.shape
    base = jnp.full((n, c), smoothing / (classes - 1), jnp.float32)
    onehot = jax.nn.one_hot(target, c, dtype=jnp.float32)
    true_dist = base * (1.0 - onehot) + confidence * onehot
    true_dist = true_dist + smoothing / classes
    return jnp.mean(jnp.sum(-true_dist * logp, axis=-1))


if __name__ == "__main__":
    key = jax.random.PRNGKey(0)
    k1, k2 = jax.random.split(key)

    N, C = 16, 32           # batch, classes (small demo shape)
    smoothing = 0.1

    pred = jax.random.normal(k1, (N, C), dtype=jnp.float32)
    target = jax.random.randint(k2, (N,), 0, C, dtype=jnp.int32)

    loss = label_smoothing_loss(pred, target, classes=C, smoothing=smoothing)
    loss = jax.block_until_ready(loss)

    ref = _reference(pred, target, C, smoothing)
    assert jnp.allclose(loss, ref, atol=1e-5, rtol=1e-5), (loss, ref)

    print("KERNEL_OK")
</pallas_src>

<mosaic_0001>
module attributes {stable_mosaic.version = 11 : i64} {
  func.func @_label_smoothing_kernel(%arg0: i32, %arg1: memref<16x32xf32, #tpu.memory_space<vmem>>, %arg2: memref<16x1xi32, #tpu.memory_space<vmem>>, %arg3: memref<8x128xf32, #tpu.memory_space<vmem>>) attributes {dimension_semantics = [#tpu.dimension_semantics<parallel>], iteration_bounds = array<i64: 1>, scalar_prefetch = 0 : i64, scratch_operands = 0 : i64, tpu.core_type = #tpu.core_type<tc>, window_params = [{transform_indices = @transform_0, window_bounds = array<i64: 16, 32>}, {transform_indices = @transform_1, window_bounds = array<i64: 16, 1>}, {transform_indices = @transform_2, window_bounds = array<i64: 8, 128>}]} {
    %c0 = arith.constant 0 : index
    %c0_0 = arith.constant 0 : index
    %0 = vector.load %arg1[%c0, %c0_0] : memref<16x32xf32, #tpu.memory_space<vmem>>, vector<16x32xf32>
    %cst = arith.constant dense<0xFF800000> : vector<16xf32>
    %1 = vector.multi_reduction <maximumf>, %0, %cst [1] : vector<16x32xf32> to vector<16xf32>
    %2 = vector.shape_cast %1 : vector<16xf32> to vector<16x1xf32>
    %3 = vector.broadcast %2 : vector<16x1xf32> to vector<16x32xf32>
    %4 = arith.subf %0, %3 : vector<16x32xf32>
    %5 = math.exp %4 : vector<16x32xf32>
    %cst_1 = arith.constant dense<0.000000e+00> : vector<16xf32>
    %6 = vector.multi_reduction <add>, %5, %cst_1 [1] : vector<16x32xf32> to vector<16xf32>
    %7 = vector.shape_cast %6 : vector<16xf32> to vector<16x1xf32>
    %8 = math.log %7 : vector<16x1xf32>
    %cst_2 = arith.constant dense<0.000000e+00> : vector<16xf32>
    %9 = vector.multi_reduction <add>, %4, %cst_2 [1] : vector<16x32xf32> to vector<16xf32>
    %10 = vector.shape_cast %9 : vector<16xf32> to vector<16x1xf32>
    %cst_3 = arith.constant 3.200000e+01 : f32
    %11 = vector.broadcast %cst_3 : f32 to vector<16x1xf32>
    %12 = arith.mulf %11, %8 : vector<16x1xf32>
    %13 = arith.subf %10, %12 : vector<16x1xf32>
    %14 = tpu.iota {dimensions = array<i32: 1>} : vector<16x32xi32>
    %c0_4 = arith.constant 0 : index
    %c0_5 = arith.constant 0 : index
    %15 = vector.load %arg2[%c0_4, %c0_5] : memref<16x1xi32, #tpu.memory_space<vmem>>, vector<16x1xi32>
    %16 = vector.broadcast %15 : vector<16x1xi32> to vector<16x32xi32>
    %17 = arith.cmpi eq, %14, %16 : vector<16x32xi32>
    %cst_6 = arith.constant 0.000000e+00 : f32
    %18 = vector.broadcast %cst_6 : f32 to vector<16x32xf32>
    %19 = arith.select %17, %4, %18 : vector<16x32xi1>, vector<16x32xf32>
    %cst_7 = arith.constant dense<0.000000e+00> : vector<16xf32>
    %20 = vector.multi_reduction <add>, %19, %cst_7 [1] : vector<16x32xf32> to vector<16xf32>
    %21 = vector.shape_cast %20 : vector<16xf32> to vector<16x1xf32>
    %22 = arith.subf %21, %8 : vector<16x1xf32>
    %cst_8 = arith.constant 0.000000e+00 : f32
    %cst_9 = arith.constant 0.00635080645 : f32
    %23 = arith.subf %cst_8, %cst_9 : f32
    %24 = vector.broadcast %23 : f32 to vector<16x1xf32>
    %25 = arith.mulf %24, %13 : vector<16x1xf32>
    %cst_10 = arith.constant 0.896774172 : f32
    %26 = vector.broadcast %cst_10 : f32 to vector<16x1xf32>
    %27 = arith.mulf %26, %22 : vector<16x1xf32>
    %28 = arith.subf %25, %27 : vector<16x1xf32>
    %29 = tpu.iota {dimensions = array<i32: 0>} : vector<16x1xi32>
    %c16_i32 = arith.constant 16 : i32
    %30 = arith.muli %arg0, %c16_i32 : i32
    %31 = vector.broadcast %30 : i32 to vector<16x1xi32>
    %32 = arith.addi %29, %31 : vector<16x1xi32>
    %c16_i32_11 = arith.constant 16 : i32
    %33 = vector.broadcast %c16_i32_11 : i32 to vector<16x1xi32>
    %34 = arith.cmpi slt, %32, %33 : vector<16x1xi32>
    %cst_12 = arith.constant 0.000000e+00 : f32
    %35 = vector.broadcast %cst_12 : f32 to vector<16x1xf32>
    %36 = arith.select %34, %28, %35 : vector<16x1xi1>, vector<16x1xf32>
    %37 = vector.shape_cast %36 : vector<16x1xf32> to vector<1x16x1xf32>
    %cst_13 = arith.constant dense<0.000000e+00> : vector<1xf32>
    %38 = vector.multi_reduction <add>, %37, %cst_13 [1, 2] : vector<1x16x1xf32> to vector<1xf32>
    %39 = vector.shape_cast %38 : vector<1xf32> to vector<1x1x1xf32>
    %40 = vector.extract %39[0, 0, 0] : f32 from vector<1x1x1xf32>
    %41 = vector.broadcast %40 : f32 to vector<8x128xf32>
    %c0_14 = arith.constant 0 : index
    %c0_15 = arith.constant 0 : index
    %42 = vector.load %arg3[%c0_14, %c0_15] : memref<8x128xf32, #tpu.memory_space<vmem>>, vector<8x128xf32>
    tpu.vector_store %arg3[%c0_14, %c0_15], %41 {strides = array<i32>} : memref<8x128xf32, #tpu.memory_space<vmem>>, vector<8x128xf32>,
    return
  }
  func.func @transform_0(%arg0: i32) -> (i32, i32) {
    %c0_i32 = arith.constant 0 : i32
    %c0_i32_0 = arith.constant 0 : i32
    return %arg0, %c0_i32 : i32, i32
  }
  func.func @transform_1(%arg0: i32) -> (i32, i32) {
    %c0_i32 = arith.constant 0 : i32
    %c0_i32_0 = arith.constant 0 : i32
    return %arg0, %c0_i32 : i32, i32
  }
  func.func @transform_2(%arg0: i32) -> (i32, i32) {
    %c0_i32 = arith.constant 0 : i32
    %c0_i32_0 = arith.constant 0 : i32
    return %arg0, %c0_i32 : i32, i32
  }
}

</mosaic_0001>

<bundles_post_ra>
// kernel: tpu_custom_call.1
= control target key start
LH: loop header
LB: loop body
LE: loop exit
PB: predicated region body
PF: predicated region fallthrough
CT: control target
= control target key end

     0   :  { %vm14_vm0 = vcmask 261120   ;;  %v153_v4 = vmov 0   ;;  %s202_s0 = inlined_call_operand.vmem [shape: f32[16,32], index: 0, kind: input, shape index: {}]   ;;  %s203_s1 = inlined_call_operand.vmem [shape: s32[16,1], index: 1, kind: input, shape index: {}]   ;;  %s204_s2 = inlined_call_operand.hbm [shape: f32[8,128], index: 2, kind: output, shape index: {}]  }
   0x1   :  { %v12_v0 = vld [vmem:[%s202_s0] sm:$0xff]  ;;  %v13_v1 = vld [vmem:[%s202_s0 + $0x8] sm:$0xff]  ;;  %119 = vset.pattern.permute.xlu1 %v153_v4  ;;  %120 = vset.pattern.permute.xlu0 %v153_v4 }
   0x2   :  { %v49_v2 = vld [vmem:[%s203_s1] sm:$0xff]  ;;  %v15_v3 = vsel %vm14_vm0, %v12_v0, -inf }
   0x3   :  { %7 = vsyncpa [#allocation3], 0  ;;  %16 = vmax.xlane.f32.xlu0 %v15_v3  ;;  %52 = vperm.xlu1 %119, %v49_v2   ;;  %v18_v5 = vsel %vm14_vm0, %v13_v1, -inf  ;;  %v50_v6 = vld [vmem:[%s203_s1 + $0x8] sm:$0xff]  ;;  %v47_v13 = vlaneseq  ;;  %vm86_vm3 = vcmask 7168   ;;  %s154_s0 = smov [#allocation2]  }
   0x4   :  { %s107_s1 = sshll.u32 %s154_s0, 4  ;;  %s108_s1 = int_to_ptr.vmem [resolvable:$true] %s107_s1 }
   0x5   :  { %v48_v17 = vand.u32 127, %v47_v13  ;;  %s129_s18 = scalar_lea.vmem %s108_s1, 128  ;;  %p134_p1 = scmp.lt.s32.totalorder %s108_s1, %s108_s1 }
   0x6   :  { %p130_p0 = scmp.ne.s32.totalorder %s108_s1, %s129_s18  ;;  %p135_p2 = scmp.lt.s32.totalorder %s129_s18, %s129_s18 }
   0x7   :  { %19 = vmax.xlane.f32.xlu0 %v18_v5  ;;  %55 = vperm.xlu1 %119, %v50_v6  }
   0x8   :  { %p136_p3 = por %p135_p2, %p134_p1 }
   0xa   :  { %p137_p4 = pnand %p136_p3, %p130_p0 }
  0x82   :  { %v53_v16 = vpop.permute.xlu1 %52 }
  0x83   :  { %vm57_vm1 = vcmp.eq.s32.totalorder %v48_v17, %v53_v16 }
  0x86   :  { %v56_v21 = vpop.permute.xlu1 %55 }
  0x87   :  { %vm58_vm2 = vcmp.eq.s32.totalorder %v48_v17, %v56_v21 }
  0x90   :  { %v17_v7 = vpop.xlane.xlu0 %16 }
  0x91   :  { %v21_v8 = vsub.f32 %v12_v0, %v17_v7 }
  0x93   :  { %v23_v9 = vmul.f32 1.442695, %v21_v8  ;;  %v37_v19 = vsel %vm14_vm0, %v21_v8, 0.0  ;;  %v59_v23 = vsel %vm57_vm1, %v21_v8, 0.0 }
  0x94   :  { %v20_v10 = vpop.xlane.xlu0 %19  ;;  %v61_v24 = vsel %vm14_vm0, %v59_v23, 0.0 }
  0x95   :  { %121 = vpow2.f32 %v23_v9  ;;  %v22_v11 = vsub.f32 %v13_v1, %v20_v10 }
  0x97   :  { %v25_v12 = vmul.f32 1.442695, %v22_v11  ;;  %v40_v22 = vsel %vm14_vm0, %v22_v11, 0.0  ;;  %v60_v25 = vsel %vm58_vm2, %v22_v11, 0.0 }
  0x98   :  { %v64_v26 = vsel %vm14_vm0, %v60_v25, 0.0 }
  0x99   :  { %123 = vpow2.f32 %v25_v12 }
  0x9f   :  { %v122_v14 = vpop.eup %121 }
  0xa0   :  { %v27_v15 = vsel %vm14_vm0, %v122_v14, 0.0 }
  0xa1   :  { %28 = vadd.xlane.f32.xlu0 %v27_v15 }
  0xa3   :  { %v124_v18 = vpop.eup %123 }
  0xa4   :  { %v30_v20 = vsel %vm14_vm0, %v124_v18, 0.0 }
  0xa5   :  { %38 = vadd.xlane.f32.xlu0 %v37_v19  ;;  %31 = vadd.xlane.f32.xlu1 %v30_v20 }
  0xa9   :  { %41 = vadd.xlane.f32.xlu0 %v40_v22 }
  0xad   :  { %62 = vadd.xlane.f32.xlu0 %v61_v24 }
  0xb1   :  { %65 = vadd.xlane.f32.xlu0 %v64_v26 }
 0x12e   :  { %v29_v27 = vpop.xlane.xlu0 %28 }
 0x12f   :  { %125 = vlog2.f32 %v29_v27 }
 0x132   :  { %v32_v28 = vpop.xlane.xlu1 %31  ;;  %v39_v29 = vpop.xlane.xlu0 %38 }
 0x133   :  { %127 = vlog2.f32 %v32_v28 }
 0x136   :  { %v42_v30 = vpop.xlane.xlu0 %41 }
 0x139   :  { %v126_v31 = vpop.eup %125 }
 0x13a   :  { %v34_v32 = vmul.f32 0.6931472, %v126_v31  ;;  %v63_v33 = vpop.xlane.xlu0 %62 }
 0x13c   :  { %v43_v34 = vmul.f32 32.0, %v34_v32  ;;  %v67_v38 = vsub.f32 %v63_v33, %v34_v32 }
 0x13d   :  { %v128_v35 = vpop.eup %127 }
 0x13e   :  { %v36_v36 = vmul.f32 0.6931472, %v128_v35  ;;  %v45_v37 = vsub.f32 %v39_v29, %v43_v34  ;;  %v66_v39 = vpop.xlane.xlu0 %65  ;;  %v71_v44 = vmul.f32 0.8967742, %v67_v38 }
 0x140   :  { %v69_v40 = vmul.f32 -0.0063508064, %v45_v37  ;;  %v44_v41 = vmul.f32 32.0, %v36_v36  ;;  %v68_v42 = vsub.f32 %v66_v39, %v36_v36 }
 0x142   :  { %v46_v43 = vsub.f32 %v42_v30, %v44_v41  ;;  %v73_v46 = vsub.f32 %v69_v40, %v71_v44  ;;  %v72_v47 = vmul.f32 0.8967742, %v68_v42 }
 0x144   :  { %v70_v45 = vmul.f32 -0.0063508064, %v46_v43  ;;  %v87_v49 = vsel %vm86_vm3, %v73_v46, 0.0 }
 0x146   :  { %v74_v48 = vsub.f32 %v70_v45, %v72_v47 }
 0x148   :  { %v88_v50 = vsel %vm86_vm3, %v74_v48, 0.0 }
 0x149   :  { %v89_v51 = vadd.f32 %v88_v50, %v87_v49 }
 0x14b   :  { %90 = vadd.xlane.f32.xlu0 %v89_v51 }
 0x1d8   :  { %v91_v52 = vpop.xlane.xlu0 %90 }
 0x1d9   :  { %v92_v53 = vrot.slane %v91_v52, 4 }
 0x1db   :  { %v93_v54 = vadd.f32 %v92_v53, %v91_v52 }
 0x1dd   :  { %v94_v55 = vrot.slane %v93_v54, 2 }
 0x1df   :  { %v95_v56 = vadd.f32 %v94_v55, %v93_v54 }
 0x1e1   :  { %v96_v57 = vrot.slane %v95_v56, 1 }
 0x1e3   :  { %v97_v58 = vadd.f32 %v96_v57, %v95_v56 }
 0x1e5   :  { %115 = vpush %v97_v58 }
 0x216   :  { %s116_s17 = spop %115 }
 0x217   :  { %v99_v59 = vstv %s116_s17 }
 0x218   :  { %100 = vst [vmem:[#allocation2] sm:$0xff] %v99_v59 }
 0x219   :  { %140 = shalt.err (!%p137_p4)
}
 0x21a   :  { %s141_s21 = scalar_lea.hbm %s204_s2, 128 }
 0x21b   :  { %p142_p5 = scmp.ne.s32.totalorder %s204_s2, %s141_s21  ;;  %p145_p6 = scmp.lt.u32.totalorder %s141_s21, %s204_s2 }
 0x21d   :  { %p147_p7 = pnand %p145_p6, %p142_p5 }
 0x21f   :  { %150 = shalt.err (!%p147_p7)
}
 0x220   :  { %110 = dma.vmem_to_hbm [thread:$0]  %s108_s1, 128, %s204_s2, [#allocation3]  }
 0x221   :  { %151 = dma.done.wait [#allocation3], 128  }
 0x222   :  { %152 = vsyncadd [#allocation3], 4294967168 }
 0x223   :  { %114 = vsyncpa [#allocation3], 1 }

</bundles_post_ra>
